<compile_context>
chip_gen: v6e
topology: v6e:2x2x1
jax: 0.10.0
libtpu: 0.0.40
codegen_flags: <defaults>
</compile_context>

<pallas_src>
import functools

import jax
import jax.numpy as jnp
from jax import lax
from jax.experimental import pallas as pl
from jax.experimental.pallas import tpu as pltpu


def _loss_kernel(pred_ref, lab_ref, out_ref, acc_ref, *, inv_b):
    """One (TB, C) tile of logits + matching (TB, 1) label tile."""
    i = pl.program_id(0)

    @pl.when(i == 0)
    def _init():
        acc_ref[...] = jnp.zeros_like(acc_ref)

    pred = pred_ref[...].astype(jnp.float32)                       # (TB, C)
    tb, c = pred.shape

    # Vectorized one-hot cross term: col index == label for this row.
    col_ids = lax.broadcasted_iota(jnp.int32, (tb, c), dimension=1)
    cross = jnp.where(col_ids == lab_ref[...], pred, 0.0)          # (TB,1) broadcast

    # Fused stable BCE-with-logits, elementwise over the tile.
    loss = jnp.maximum(pred, 0.0) - cross + jnp.log1p(jnp.exp(-jnp.abs(pred)))

    # Pure VPU accumulation into a vreg-resident (TB, C) scratch.
    acc_ref[...] += loss

    @pl.when(i == pl.num_programs(0) - 1)
    def _finalize():
        out_ref[0, 0] = jnp.sum(acc_ref[...]) * jnp.float32(inv_b)  # static 1/B


_VMEM_TILE_BUDGET = 12 * 1024 * 1024  # bytes: acc + double-buffered inputs, with headroom


def _choose_row_tile(b: int, c: int, dtype) -> int:
    """Largest divisor of B (<= 8192) that fits VMEM and respects dtype tiling."""
    itemsize = jnp.dtype(dtype).itemsize
    min_rows = {4: 8, 2: 16, 1: 32}.get(itemsize, 8)  # sublane-packing minimum
    # Per row: f32 accumulator + double-buffered logits tile + double-buffered label.
    bytes_per_row = c * (4 + 2 * itemsize) + 2 * 4
    for tb in (8192, 4096, 2048, 1024, 512, 256, 128, 64, 32, 16, 8):
        if tb >= min_rows and b % tb == 0 and tb * bytes_per_row <= _VMEM_TILE_BUDGET:
            return tb
    return b  # fall back to a single full-array block


def pointnet_loss(cls_pred: jax.Array, label: jax.Array) -> jax.Array:
    """cls_pred: (B, C) logits (any float dtype), label: (B,) ints. Returns f32 scalar.

    Matches pointnet_2.Loss.forward: one-hot(label) -> stable BCE-with-logits,
    summed over every element and divided by the batch size B.
    """
    b, c = cls_pred.shape
    label2d = label.astype(jnp.int32).reshape(b, 1)

    tb = _choose_row_tile(b, c, cls_pred.dtype)
    grid = (b // tb,)

    kernel = functools.partial(_loss_kernel, inv_b=1.0 / b)

    out = pl.pallas_call(
        kernel,
        out_shape=jax.ShapeDtypeStruct((1, 1), jnp.float32),
        grid_spec=pltpu.PrefetchScalarGridSpec(
            num_scalar_prefetch=0,
            grid=grid,
            in_specs=[
                pl.BlockSpec((tb, c), lambda i: (i, 0)),   # logits tile (native dtype)
                pl.BlockSpec((tb, 1), lambda i: (i, 0)),   # label column tile (int32)
            ],
            out_specs=pl.BlockSpec(memory_space=pltpu.SMEM),  # (1,1) scalar output
            scratch_shapes=[pltpu.VMEM((tb, c), jnp.float32)],  # elementwise accumulator
        ),
        compiler_params=pltpu.CompilerParams(
            dimension_semantics=("arbitrary",),  # grid axis is a reduction
        ),
    )(cls_pred, label2d)
    return out[0, 0]


def _reference_loss(cls_pred, label):
    # Plain-JAX replica of the PyTorch forward for verification.
    B, C = cls_pred.shape
    labels = jax.nn.one_hot(label, C, dtype=jnp.float32)
    x = cls_pred.astype(jnp.float32)
    loss = jnp.clip(x, 0.0, None) - x * labels
    loss = loss + jnp.log1p(jnp.exp(-jnp.abs(x)))
    return jnp.sum(loss) / B


if __name__ == "__main__":
    key = jax.random.PRNGKey(0)
    k1, k2, k3, k4 = jax.random.split(key, 4)

    # Case 1: small f32 batch (single tile).
    B, C = 8, 16
    cls_pred = jax.random.normal(k1, (B, C), dtype=jnp.float32)
    label = jax.random.randint(k2, (B,), 0, C, dtype=jnp.int32)

    result = pointnet_loss(cls_pred, label)
    jax.block_until_ready(result)
    ref = _reference_loss(cls_pred, label)
    assert jnp.allclose(result, ref, atol=1e-5, rtol=1e-5), (result, ref)

    # Case 2: bf16 logits, batch that forces a multi-step grid (tb=16, 3 tiles).
    B2, C2 = 48, 24
    cls_pred2 = jax.random.normal(k3, (B2, C2), dtype=jnp.bfloat16)
    label2 = jax.random.randint(k4, (B2,), 0, C2, dtype=jnp.int32)

    result2 = pointnet_loss(cls_pred2, label2)
    jax.block_until_ready(result2)
    ref2 = _reference_loss(cls_pred2, label2)
    assert jnp.allclose(result2, ref2, atol=1e-4, rtol=1e-4), (result2, ref2)

    print("KERNEL_OK")
</pallas_src>

<mosaic_0001>
module attributes {stable_mosaic.version = 11 : i64} {
  func.func @_loss_kernel(%arg0: i32, %arg1: memref<8x16xf32, #tpu.memory_space<vmem>>, %arg2: memref<8x1xi32, #tpu.memory_space<vmem>>, %arg3: memref<1x1xf32, #tpu.memory_space<smem>>, %arg4: memref<8x16xf32, #tpu.memory_space<vmem>>) attributes {dimension_semantics = [#tpu.dimension_semantics<arbitrary>], iteration_bounds = array<i64: 1>, scalar_prefetch = 0 : i64, scratch_operands = 1 : i64, tpu.core_type = #tpu.core_type<tc>, window_params = [{transform_indices = @transform_0, window_bounds = array<i64: 8, 16>}, {transform_indices = @transform_1, window_bounds = array<i64: 8, 1>}, {transform_indices = @transform_2, window_bounds = array<i64: 1, 1>}]} {
    %c0_i32 = arith.constant 0 : i32
    %0 = arith.cmpi eq, %arg0, %c0_i32 : i32
    %1 = arith.extui %0 : i1 to i32
    %c0_i32_0 = arith.constant 0 : i32
    %2 = arith.cmpi ne, %1, %c0_i32_0 : i32
    scf.if %2 {
      %cst_12 = arith.constant 0.000000e+00 : f32
      %25 = vector.broadcast %cst_12 : f32 to vector<8x16xf32>
      %c0_13 = arith.constant 0 : index
      %c0_14 = arith.constant 0 : index
      %26 = vector.load %arg4[%c0_13, %c0_14] : memref<8x16xf32, #tpu.memory_space<vmem>>, vector<8x16xf32>
      tpu.vector_store %arg4[%c0_13, %c0_14], %25 {strides = array<i32>} : memref<8x16xf32, #tpu.memory_space<vmem>>, vector<8x16xf32>,
    } else {
    }
    %c0 = arith.constant 0 : index
    %c0_1 = arith.constant 0 : index
    %3 = vector.load %arg1[%c0, %c0_1] : memref<8x16xf32, #tpu.memory_space<vmem>>, vector<8x16xf32>
    %4 = tpu.iota {dimensions = array<i32: 1>} : vector<8x16xi32>
    %c0_2 = arith.constant 0 : index
    %c0_3 = arith.constant 0 : index
    %5 = vector.load %arg2[%c0_2, %c0_3] : memref<8x1xi32, #tpu.memory_space<vmem>>, vector<8x1xi32>
    %6 = vector.broadcast %5 : vector<8x1xi32> to vector<8x16xi32>
    %7 = arith.cmpi eq, %4, %6 : vector<8x16xi32>
    %cst = arith.constant 0.000000e+00 : f32
    %8 = vector.broadcast %cst : f32 to vector<8x16xf32>
    %9 = arith.select %7, %3, %8 : vector<8x16xi1>, vector<8x16xf32>
    %cst_4 = arith.constant 0.000000e+00 : f32
    %10 = vector.broadcast %cst_4 : f32 to vector<8x16xf32>
    %11 = arith.maximumf %3, %10 : vector<8x16xf32>
    %12 = arith.subf %11, %9 : vector<8x16xf32>
    %13 = math.absf %3 : vector<8x16xf32>
    %cst_5 = arith.constant 0.000000e+00 : f32
    %14 = vector.broadcast %cst_5 : f32 to vector<8x16xf32>
    %15 = arith.subf %14, %13 : vector<8x16xf32>
    %16 = math.exp %15 : vector<8x16xf32>
    %17 = math.log1p %16 : vector<8x16xf32>
    %18 = arith.addf %12, %17 : vector<8x16xf32>
    %c0_6 = arith.constant 0 : index
    %c0_7 = arith.constant 0 : index
    %19 = vector.load %arg4[%c0_6, %c0_7] : memref<8x16xf32, #tpu.memory_space<vmem>>, vector<8x16xf32>
    %20 = arith.addf %19, %18 : vector<8x16xf32>
    %c0_8 = arith.constant 0 : index
    %c0_9 = arith.constant 0 : index
    %21 = vector.load %arg4[%c0_8, %c0_9] : memref<8x16xf32, #tpu.memory_space<vmem>>, vector<8x16xf32>
    tpu.vector_store %arg4[%c0_8, %c0_9], %20 {strides = array<i32>} : memref<8x16xf32, #tpu.memory_space<vmem>>, vector<8x16xf32>,
    %c0_i32_10 = arith.constant 0 : i32
    %22 = arith.cmpi eq, %arg0, %c0_i32_10 : i32
    %23 = arith.extui %22 : i1 to i32
    %c0_i32_11 = arith.constant 0 : i32
    %24 = arith.cmpi ne, %23, %c0_i32_11 : i32
    scf.if %24 {
      %c0_12 = arith.constant 0 : index
      %c0_13 = arith.constant 0 : index
      %25 = vector.load %arg4[%c0_12, %c0_13] : memref<8x16xf32, #tpu.memory_space<vmem>>, vector<8x16xf32>
      %26 = vector.shape_cast %25 : vector<8x16xf32> to vector<1x8x16xf32>
      %cst_14 = arith.constant dense<0.000000e+00> : vector<1xf32>
      %27 = vector.multi_reduction <add>, %26, %cst_14 [1, 2] : vector<1x8x16xf32> to vector<1xf32>
      %28 = vector.shape_cast %27 : vector<1xf32> to vector<1x1x1xf32>
      %29 = vector.extract %28[0, 0, 0] : f32 from vector<1x1x1xf32>
      %cst_15 = arith.constant 1.250000e-01 : f32
      %30 = arith.mulf %29, %cst_15 : f32
      %c0_16 = arith.constant 0 : index
      %c0_17 = arith.constant 0 : index
      %31 = memref.load %arg3[%c0_16, %c0_17] : memref<1x1xf32, #tpu.memory_space<smem>>
      memref.store %30, %arg3[%c0_16, %c0_17] : memref<1x1xf32, #tpu.memory_space<smem>>
    } else {
    }
    return
  }
  func.func @transform_0(%arg0: i32) -> (i32, i32) {
    %c0_i32 = arith.constant 0 : i32
    %c0_i32_0 = arith.constant 0 : i32
    return %arg0, %c0_i32 : i32, i32
  }
  func.func @transform_1(%arg0: i32) -> (i32, i32) {
    %c0_i32 = arith.constant 0 : i32
    %c0_i32_0 = arith.constant 0 : i32
    return %arg0, %c0_i32 : i32, i32
  }
  func.func @transform_2(%arg0: i32) -> (i32, i32) {
    %c0_i32 = arith.constant 0 : i32
    %c0_i32_0 = arith.constant 0 : i32
    %c0_i32_1 = arith.constant 0 : i32
    return %c0_i32, %c0_i32_0 : i32, i32
  }
}

</mosaic_0001>

<bundles_post_ra>
// kernel: tpu_custom_call.1
= control target key start
LH: loop header
LB: loop body
LE: loop exit
PB: predicated region body
PF: predicated region fallthrough
CT: control target
= control target key end

     0   :  { %vm16_vm0 = vcmask 130048   ;;  %v97_v1 = vmov 0   ;;  %v98_v2 = vmov 0.0   ;;  %s127_s0 = inlined_call_operand.vmem [shape: f32[8,16], index: 0, kind: input, shape index: {}]   ;;  %s128_s1 = inlined_call_operand.vmem [shape: s32[8,1], index: 1, kind: input, shape index: {}]   ;;  %s129_s2 = inlined_call_operand.hbm [shape: f32[1,1], index: 2, kind: output, shape index: {}]  }
   0x1   :  { %v21_v0 = vld [vmem:[%s128_s1] sm:$0xff]  ;;  %82 = vset.pattern.permute.xlu0 %v97_v1  ;;  %17 = vst.msk [vmem:[#allocation2] sm:$0xff] %vm16_vm0, %v98_v2 }
   0x2   :  { %7 = vsyncpa [#allocation4], 0  ;;  %23 = vperm.xlu0 %82, %v21_v0   ;;  %v18_v3 = vld [vmem:[%s127_s0] sm:$0xff]  ;;  %v19_v10 = vlaneseq  ;;  %s99_s13 = smov [#allocation3]  }
   0x3   :  { %v29_v4 = vand.u32 2147483647, %v18_v3  ;;  %v27_v17 = vmax.f32 %v18_v3, 0.0 }
   0x4   :  { %v20_v14 = vand.u32 127, %v19_v10 }
   0x5   :  { %v30_v5 = vsub.f32 0.0, %v29_v4 }
   0x7   :  { %v31_v6 = vmul.f32 1.442695, %v30_v5 }
   0x8   :  { %v43_v22 = vld [vmem:[#allocation2] sm:$0xff] }
   0x9   :  { %83 = vpow2.f32 %v31_v6 }
  0x16   :  { %v84_v7 = vpop.eup %83 }
  0x17   :  { %v33_v8 = vadd.f32 1.0, %v84_v7  ;;  %v36_v9 = vmul.f32 -0.5, %v84_v7  ;;  %v39_v13 = vand.u32 2147483647, %v84_v7 }
  0x19   :  { %85 = vlog2.f32 %v33_v8  ;;  %v37_v11 = vadd.f32 1.0, %v36_v9  ;;  %vm40_vm1 = vcmp.lt.f32.partialorder %v39_v13, 0.0004427343 }
  0x1b   :  { %v38_v16 = vmul.f32 %v84_v7, %v37_v11 }
  0x26   :  { %v86_v12 = vpop.eup %85 }
  0x27   :  { %v35_v15 = vmul.f32 0.6931472, %v86_v12 }
  0x29   :  { %v41_v20 = vsel %vm40_vm1, %v38_v16, %v35_v15 }
  0x7d   :  { %v24_v18 = vpop.permute.xlu0 %23 }
  0x7e   :  { %vm25_vm2 = vcmp.eq.s32.totalorder %v20_v14, %v24_v18 }
  0x7f   :  { %v26_v19 = vsel %vm25_vm2, %v18_v3, 0.0 }
  0x80   :  { %v28_v21 = vsub.f32 %v27_v17, %v26_v19 }
  0x82   :  { %v42_v23 = vadd.f32 %v41_v20, %v28_v21 }
  0x84   :  { %v44_v24 = vadd.f32 %v43_v22, %v42_v23 }
  0x86   :  { %46 = vst.msk [vmem:[#allocation2] sm:$0xff] %vm16_vm0, %v44_v24 }
  0x8d   :  { %v50_v25 = vld [vmem:[#allocation2] sm:$0xff] }
  0x8e   :  { %v51_v26 = vsel %vm16_vm0, %v50_v25, 0.0 }
  0x8f   :  { %52 = vadd.xlane.f32.xlu0 %v51_v26 }
 0x118   :  { %v53_v27 = vpop.xlane.xlu0 %52 }
 0x119   :  { %v54_v28 = vrot.slane %v53_v27, 4 }
 0x11b   :  { %v55_v29 = vadd.f32 %v54_v28, %v53_v27 }
 0x11d   :  { %v56_v30 = vrot.slane %v55_v29, 2 }
 0x11f   :  { %v57_v31 = vadd.f32 %v56_v30, %v55_v29 }
 0x121   :  { %v58_v32 = vrot.slane %v57_v31, 1 }
 0x123   :  { %v59_v33 = vadd.f32 %v58_v32, %v57_v31 }
 0x125   :  { %77 = vpush %v59_v33 }
 0x156   :  { %s78_s0 = spop %77 }
 0x157   :  { %s61_s1 = smul.f32 0.125, %s78_s0 }
 0x159   :  { %63 = sst [smem:[#allocation3]] %s61_s1 }
 0x15a   :  { %71 = dma.smem_to_hbm %s99_s13, 16, %s129_s2, [#allocation4]  }
 0x15b   :  { %95 = dma.done.wait [#allocation4], 16  }
 0x15c   :  { %96 = vsyncadd [#allocation4], 4294967280 }
 0x15d   :  { %75 = sfence }
 0x15e   :  { %76 = vsyncpa [#allocation4], 1 }

</bundles_post_ra>
